<compile_context>
chip_gen: v5e
topology: v5e:2x2
jax: 0.10.0
libtpu: 0.0.40
codegen_flags: <defaults>
</compile_context>

<pallas_src>
import functools

import jax
import jax.numpy as jnp
from jax.experimental import pallas as pl
from jax.experimental.pallas import tpu as pltpu

IM_SIZE = 28
IN_DIM = IM_SIZE * IM_SIZE   # 784
HIDDEN = 50
NUM_CLASSES = 10
NUM_LAYERS = 6               # 5 hidden (ReLU) + 1 output

HIDDEN_PAD = 128             # 50  -> 128 : lane-dense VPU ops / MXU N-dim
OUT_PAD = 128                # 10  -> 128 : lane-dense (unmasked) output stores
DEFAULT_TILE_B = 2048        # bf16 input tile: 2 x 2048 x 784 x 2B ~= 6.4 MiB
SUBLANE = 16                 # bf16 packs 16 rows per sublane group


def _round_up(x, m):
    return (x + m - 1) // m * m


def _choose_tile_b(batch, max_tile=DEFAULT_TILE_B):
    """Pick a batch tile that (a) gives >= 2 grid steps on non-tiny batches so
    both v7x TensorCores get work, and (b) keeps batch-padding waste small."""
    full = _round_up(batch, SUBLANE)
    if full <= 2 * SUBLANE:
        return full                                      # tiny batch: one step
    tile = min(max_tile, _round_up(pl.cdiv(full, 2), SUBLANE))
    # Shrink the tile until padding waste is < ~12.5% of the batch.
    while tile > SUBLANE and _round_up(batch, tile) - batch > max(batch // 8, SUBLANE):
        tile = _round_up(tile // 2, SUBLANE)
    return tile


def _shadow_net_kernel(x_ref,
                       w0, b0, w1, b1, w2, b2, w3, b3, w4, b4, w5, b5,
                       out_ref, *, smax, num_classes):
    """Whole MLP hot path for one batch tile (weights stay VMEM-resident)."""
    h = x_ref[...]                                  # bf16 (tile_b, 784)
    # 5 x (Linear -> ReLU): bf16 MXU matmul, f32 accumulate / bias / ReLU.
    for w_ref, b_ref in ((w0, b0), (w1, b1), (w2, b2), (w3, b3), (w4, b4)):
        acc = jnp.dot(h, w_ref[...], preferred_element_type=jnp.float32)
        acc = acc + b_ref[...]
        h = jnp.maximum(acc, 0.0).astype(jnp.bfloat16)
    # Final Linear: padded logits; columns >= num_classes are exactly 0
    # (zero-padded weights & bias), which the softmax correction relies on.
    logits = jnp.dot(h, w5[...], preferred_element_type=jnp.float32) + b5[...]
    if smax:
        n_pad = logits.shape[-1] - num_classes
        m = jnp.max(logits, axis=1, keepdims=True)   # >= 0 (padded zero columns)
        e = jnp.exp(logits - m)
        # Each padded column contributed exp(0 - m); remove them in closed form
        # instead of an iota/where mask.
        s = jnp.sum(e, axis=1, keepdims=True) - n_pad * jnp.exp(-m)
        s = jnp.maximum(s, jnp.finfo(jnp.float32).tiny)
        logits = e * pl.reciprocal(s, approx=False)  # exact: rows sum to 1
    out_ref[...] = logits.astype(out_ref.dtype)


def init_shadow_net_params(key, im_size=IM_SIZE, num_classes=NUM_CLASSES):
    """PyTorch-layout params mirroring the module init:
    orthogonal_ on each Linear weight (shape (out, in)), zero bias (out,)."""
    dims = [im_size * im_size, HIDDEN, HIDDEN, HIDDEN, HIDDEN, HIDDEN, num_classes]
    ortho = jax.nn.initializers.orthogonal()
    params = []
    for i in range(NUM_LAYERS):
        key, sub = jax.random.split(key)
        w = ortho(sub, (dims[i + 1], dims[i]), jnp.float32)   # (out, in)
        b = jnp.zeros((dims[i + 1],), jnp.float32)
        params.append((w, b))
    return params


def pack_params(params):
    """Transpose PyTorch (out, in) weights to (in, out), zero-pad feature dims
    to multiples of 128 and cast weights to bf16 (biases stay f32, (1, out))."""
    packed = []
    for i, (w, b) in enumerate(params):
        w_t = w.T                                       # (in, out)
        in_dim, out_dim = w_t.shape
        in_pad = in_dim if i == 0 else HIDDEN_PAD       # layer-0 K stays 784
        out_pad = OUT_PAD if i == NUM_LAYERS - 1 else HIDDEN_PAD
        w_p = jnp.zeros((in_pad, out_pad), jnp.float32).at[:in_dim, :out_dim].set(w_t)
        b_p = jnp.zeros((1, out_pad), jnp.float32).at[0, :out_dim].set(b)
        packed.append((w_p.astype(jnp.bfloat16), b_p))
    return packed


def shadow_net_forward(x, packed_params, smax=False, num_classes=NUM_CLASSES,
                       tile_b=None, out_dtype=jnp.bfloat16, vmem_limit_bytes=None):
    """x: (B, 1, im_size, im_size) NCHW or already-flat (B, D); ideally bf16.
    packed_params: output of pack_params().  Returns (B, num_classes) out_dtype."""
    batch = x.shape[0]
    # Input is streamed to the kernel in bf16 (dominant HBM stream halved vs f32).
    # If x is already bf16 upstream this cast is a no-op.
    x_flat = x.reshape(batch, -1).astype(jnp.bfloat16)
    d = x_flat.shape[1]

    if tile_b is None:
        tile_b = _choose_tile_b(batch)
    padded_b = _round_up(batch, tile_b)
    if padded_b != batch:
        x_flat = jnp.pad(x_flat, ((0, padded_b - batch), (0, 0)))

    flat_params = []
    for w, b in packed_params:
        flat_params += [w, b]

    if vmem_limit_bytes is None:
        # Explicit budget: double-buffered input/output tiles + resident params
        # + generous in-kernel f32 temporaries; 2x headroom, capped under the
        # 64 MiB physical VMEM of v7x.
        param_bytes = sum(int(p.size) * p.dtype.itemsize for p in flat_params)
        in_bytes = 2 * tile_b * d * x_flat.dtype.itemsize
        out_bytes = 2 * tile_b * OUT_PAD * jnp.dtype(out_dtype).itemsize
        tmp_bytes = tile_b * (d + 6 * HIDDEN_PAD) * 4
        vmem_limit_bytes = int(min(max(2 * (param_bytes + in_bytes + out_bytes
                                            + tmp_bytes), 32 << 20), 48 << 20))

    grid = (padded_b // tile_b,)
    x_spec = pl.BlockSpec((tile_b, d), lambda i: (i, 0))
    # Weights/biases: same (full) block every step -> stay VMEM-resident.
    param_specs = [pl.BlockSpec(p.shape, lambda i: (0, 0)) for p in flat_params]
    out_spec = pl.BlockSpec((tile_b, OUT_PAD), lambda i: (i, 0))

    kernel = functools.partial(_shadow_net_kernel, smax=smax,
                               num_classes=num_classes)
    out_padded = pl.pallas_call(
        kernel,
        out_shape=jax.ShapeDtypeStruct((padded_b, OUT_PAD), out_dtype),
        grid=grid,
        in_specs=[x_spec] + param_specs,
        out_specs=out_spec,
        compiler_params=pltpu.CompilerParams(
            dimension_semantics=("parallel",),
            vmem_limit_bytes=vmem_limit_bytes),
    )(x_flat, *flat_params)

    # TODO(synk): downstream consumers could take the padded (B, 128) slab
    # directly to avoid this extra slice pass on a mem-bound path.
    return out_padded[:batch, :num_classes]


if __name__ == "__main__":
    key = jax.random.PRNGKey(0)
    pkey, xkey = jax.random.split(key)

    params = init_shadow_net_params(pkey)        # PyTorch layout (out, in), f32
    packed = pack_params(params)                 # kernel layout, padded, bf16

    # Small example batch, NCHW like the PyTorch module would receive.
    # Produced in bf16 "upstream" so the kernel streams bf16 with no extra cast.
    x = jax.random.normal(xkey, (2, 1, IM_SIZE, IM_SIZE),
                          dtype=jnp.float32).astype(jnp.bfloat16)

    fwd = jax.jit(shadow_net_forward, static_argnames=("smax",))
    logits = fwd(x, packed, smax=False)
    probs = fwd(x, packed, smax=True)
    jax.block_until_ready(logits)
    jax.block_until_ready(probs)

    assert logits.shape == (2, NUM_CLASSES)
    assert probs.shape == (2, NUM_CLASSES)

    # Pure-JAX f32 reference; loose tolerance because kernel runs bf16 matmuls
    # and emits bf16 outputs.
    def reference(xin, ps, do_smax):
        h = xin.astype(jnp.float32).reshape(xin.shape[0], -1)
        for i, (w, b) in enumerate(ps):
            h = h @ w.T + b
            if i < NUM_LAYERS - 1:
                h = jnp.maximum(h, 0.0)
        return jax.nn.softmax(h, axis=1) if do_smax else h

    ref_logits = reference(x, params, False)
    ref_probs = reference(x, params, True)
    assert jnp.allclose(logits.astype(jnp.float32), ref_logits, atol=2e-1, rtol=2e-1)
    assert jnp.allclose(probs.astype(jnp.float32), ref_probs, atol=5e-2)
    assert jnp.allclose(jnp.sum(probs.astype(jnp.float32), axis=1), 1.0, atol=1e-2)

    print("KERNEL_OK")
</pallas_src>

<mosaic_0001>
module attributes {stable_mosaic.version = 11 : i64} {
  func.func @_shadow_net_kernel(%arg0: i32, %arg1: memref<16x784xbf16, #tpu.memory_space<vmem>>, %arg2: memref<784x128xbf16, #tpu.memory_space<vmem>>, %arg3: memref<1x128xf32, #tpu.memory_space<vmem>>, %arg4: memref<128x128xbf16, #tpu.memory_space<vmem>>, %arg5: memref<1x128xf32, #tpu.memory_space<vmem>>, %arg6: memref<128x128xbf16, #tpu.memory_space<vmem>>, %arg7: memref<1x128xf32, #tpu.memory_space<vmem>>, %arg8: memref<128x128xbf16, #tpu.memory_space<vmem>>, %arg9: memref<1x128xf32, #tpu.memory_space<vmem>>, %arg10: memref<128x128xbf16, #tpu.memory_space<vmem>>, %arg11: memref<1x128xf32, #tpu.memory_space<vmem>>, %arg12: memref<128x128xbf16, #tpu.memory_space<vmem>>, %arg13: memref<1x128xf32, #tpu.memory_space<vmem>>, %arg14: memref<16x128xbf16, #tpu.memory_space<vmem>>) attributes {dimension_semantics = [#tpu.dimension_semantics<parallel>], iteration_bounds = array<i64: 1>, scalar_prefetch = 0 : i64, scratch_operands = 0 : i64, tpu.core_type = #tpu.core_type<tc>, window_params = [{transform_indices = @transform_0, window_bounds = array<i64: 16, 784>}, {pipeline_mode = #tpu.pipeline_mode<synchronous>, transform_indices = @transform_1, window_bounds = array<i64: 784, 128>}, {pipeline_mode = #tpu.pipeline_mode<synchronous>, transform_indices = @transform_2, window_bounds = array<i64: 1, 128>}, {pipeline_mode = #tpu.pipeline_mode<synchronous>, transform_indices = @transform_3, window_bounds = array<i64: 128, 128>}, {pipeline_mode = #tpu.pipeline_mode<synchronous>, transform_indices = @transform_4, window_bounds = array<i64: 1, 128>}, {pipeline_mode = #tpu.pipeline_mode<synchronous>, transform_indices = @transform_5, window_bounds = array<i64: 128, 128>}, {pipeline_mode = #tpu.pipeline_mode<synchronous>, transform_indices = @transform_6, window_bounds = array<i64: 1, 128>}, {pipeline_mode = #tpu.pipeline_mode<synchronous>, transform_indices = @transform_7, window_bounds = array<i64: 128, 128>}, {pipeline_mode = #tpu.pipeline_mode<synchronous>, transform_indices = @transform_8, window_bounds = array<i64: 1, 128>}, {pipeline_mode = #tpu.pipeline_mode<synchronous>, transform_indices = @transform_9, window_bounds = array<i64: 128, 128>}, {pipeline_mode = #tpu.pipeline_mode<synchronous>, transform_indices = @transform_10, window_bounds = array<i64: 1, 128>}, {pipeline_mode = #tpu.pipeline_mode<synchronous>, transform_indices = @transform_11, window_bounds = array<i64: 128, 128>}, {pipeline_mode = #tpu.pipeline_mode<synchronous>, transform_indices = @transform_12, window_bounds = array<i64: 1, 128>}, {transform_indices = @transform_13, window_bounds = array<i64: 16, 128>}]} {
    %c0 = arith.constant 0 : index
    %c0_0 = arith.constant 0 : index
    %0 = vector.load %arg1[%c0, %c0_0] : memref<16x784xbf16, #tpu.memory_space<vmem>>, vector<16x784xbf16>
    %c0_1 = arith.constant 0 : index
    %c0_2 = arith.constant 0 : index
    %1 = vector.load %arg2[%c0_1, %c0_2] : memref<784x128xbf16, #tpu.memory_space<vmem>>, vector<784x128xbf16>
    %cst = arith.constant dense<0.000000e+00> : vector<16x128xf32>
    %2 = tpu.matmul %0, %1, %cst {dimension_numbers = #tpu.dot_dimension_numbers<[1], [0], [0], [1], [0, 0, 1, 1], [], []>} : vector<16x784xbf16>, vector<784x128xbf16>, vector<16x128xf32> -> vector<16x128xf32>
    %c0_3 = arith.constant 0 : index
    %c0_4 = arith.constant 0 : index
    %3 = vector.load %arg3[%c0_3, %c0_4] : memref<1x128xf32, #tpu.memory_space<vmem>>, vector<1x128xf32>
    %4 = vector.broadcast %3 : vector<1x128xf32> to vector<16x128xf32>
    %5 = arith.addf %2, %4 : vector<16x128xf32>
    %cst_5 = arith.constant 0.000000e+00 : f32
    %6 = vector.broadcast %cst_5 : f32 to vector<16x128xf32>
    %7 = arith.maximumf %5, %6 : vector<16x128xf32>
    %8 = arith.truncf %7 : vector<16x128xf32> to vector<16x128xbf16>
    %c0_6 = arith.constant 0 : index
    %c0_7 = arith.constant 0 : index
    %9 = vector.load %arg4[%c0_6, %c0_7] : memref<128x128xbf16, #tpu.memory_space<vmem>>, vector<128x128xbf16>
    %cst_8 = arith.constant dense<0.000000e+00> : vector<16x128xf32>
    %10 = tpu.matmul %8, %9, %cst_8 {dimension_numbers = #tpu.dot_dimension_numbers<[1], [0], [0], [1], [0, 0, 1, 1], [], []>} : vector<16x128xbf16>, vector<128x128xbf16>, vector<16x128xf32> -> vector<16x128xf32>
    %c0_9 = arith.constant 0 : index
    %c0_10 = arith.constant 0 : index
    %11 = vector.load %arg5[%c0_9, %c0_10] : memref<1x128xf32, #tpu.memory_space<vmem>>, vector<1x128xf32>
    %12 = vector.broadcast %11 : vector<1x128xf32> to vector<16x128xf32>
    %13 = arith.addf %10, %12 : vector<16x128xf32>
    %cst_11 = arith.constant 0.000000e+00 : f32
    %14 = vector.broadcast %cst_11 : f32 to vector<16x128xf32>
    %15 = arith.maximumf %13, %14 : vector<16x128xf32>
    %16 = arith.truncf %15 : vector<16x128xf32> to vector<16x128xbf16>
    %c0_12 = arith.constant 0 : index
    %c0_13 = arith.constant 0 : index
    %17 = vector.load %arg6[%c0_12, %c0_13] : memref<128x128xbf16, #tpu.memory_space<vmem>>, vector<128x128xbf16>
    %cst_14 = arith.constant dense<0.000000e+00> : vector<16x128xf32>
    %18 = tpu.matmul %16, %17, %cst_14 {dimension_numbers = #tpu.dot_dimension_numbers<[1], [0], [0], [1], [0, 0, 1, 1], [], []>} : vector<16x128xbf16>, vector<128x128xbf16>, vector<16x128xf32> -> vector<16x128xf32>
    %c0_15 = arith.constant 0 : index
    %c0_16 = arith.constant 0 : index
    %19 = vector.load %arg7[%c0_15, %c0_16] : memref<1x128xf32, #tpu.memory_space<vmem>>, vector<1x128xf32>
    %20 = vector.broadcast %19 : vector<1x128xf32> to vector<16x128xf32>
    %21 = arith.addf %18, %20 : vector<16x128xf32>
    %cst_17 = arith.constant 0.000000e+00 : f32
    %22 = vector.broadcast %cst_17 : f32 to vector<16x128xf32>
    %23 = arith.maximumf %21, %22 : vector<16x128xf32>
    %24 = arith.truncf %23 : vector<16x128xf32> to vector<16x128xbf16>
    %c0_18 = arith.constant 0 : index
    %c0_19 = arith.constant 0 : index
    %25 = vector.load %arg8[%c0_18, %c0_19] : memref<128x128xbf16, #tpu.memory_space<vmem>>, vector<128x128xbf16>
    %cst_20 = arith.constant dense<0.000000e+00> : vector<16x128xf32>
    %26 = tpu.matmul %24, %25, %cst_20 {dimension_numbers = #tpu.dot_dimension_numbers<[1], [0], [0], [1], [0, 0, 1, 1], [], []>} : vector<16x128xbf16>, vector<128x128xbf16>, vector<16x128xf32> -> vector<16x128xf32>
    %c0_21 = arith.constant 0 : index
    %c0_22 = arith.constant 0 : index
    %27 = vector.load %arg9[%c0_21, %c0_22] : memref<1x128xf32, #tpu.memory_space<vmem>>, vector<1x128xf32>
    %28 = vector.broadcast %27 : vector<1x128xf32> to vector<16x128xf32>
    %29 = arith.addf %26, %28 : vector<16x128xf32>
    %cst_23 = arith.constant 0.000000e+00 : f32
    %30 = vector.broadcast %cst_23 : f32 to vector<16x128xf32>
    %31 = arith.maximumf %29, %30 : vector<16x128xf32>
    %32 = arith.truncf %31 : vector<16x128xf32> to vector<16x128xbf16>
    %c0_24 = arith.constant 0 : index
    %c0_25 = arith.constant 0 : index
    %33 = vector.load %arg10[%c0_24, %c0_25] : memref<128x128xbf16, #tpu.memory_space<vmem>>, vector<128x128xbf16>
    %cst_26 = arith.constant dense<0.000000e+00> : vector<16x128xf32>
    %34 = tpu.matmul %32, %33, %cst_26 {dimension_numbers = #tpu.dot_dimension_numbers<[1], [0], [0], [1], [0, 0, 1, 1], [], []>} : vector<16x128xbf16>, vector<128x128xbf16>, vector<16x128xf32> -> vector<16x128xf32>
    %c0_27 = arith.constant 0 : index
    %c0_28 = arith.constant 0 : index
    %35 = vector.load %arg11[%c0_27, %c0_28] : memref<1x128xf32, #tpu.memory_space<vmem>>, vector<1x128xf32>
    %36 = vector.broadcast %35 : vector<1x128xf32> to vector<16x128xf32>
    %37 = arith.addf %34, %36 : vector<16x128xf32>
    %cst_29 = arith.constant 0.000000e+00 : f32
    %38 = vector.broadcast %cst_29 : f32 to vector<16x128xf32>
    %39 = arith.maximumf %37, %38 : vector<16x128xf32>
    %40 = arith.truncf %39 : vector<16x128xf32> to vector<16x128xbf16>
    %c0_30 = arith.constant 0 : index
    %c0_31 = arith.constant 0 : index
    %41 = vector.load %arg12[%c0_30, %c0_31] : memref<128x128xbf16, #tpu.memory_space<vmem>>, vector<128x128xbf16>
    %cst_32 = arith.constant dense<0.000000e+00> : vector<16x128xf32>
    %42 = tpu.matmul %40, %41, %cst_32 {dimension_numbers = #tpu.dot_dimension_numbers<[1], [0], [0], [1], [0, 0, 1, 1], [], []>} : vector<16x128xbf16>, vector<128x128xbf16>, vector<16x128xf32> -> vector<16x128xf32>
    %c0_33 = arith.constant 0 : index
    %c0_34 = arith.constant 0 : index
    %43 = vector.load %arg13[%c0_33, %c0_34] : memref<1x128xf32, #tpu.memory_space<vmem>>, vector<1x128xf32>
    %44 = vector.broadcast %43 : vector<1x128xf32> to vector<16x128xf32>
    %45 = arith.addf %42, %44 : vector<16x128xf32>
    %46 = arith.truncf %45 : vector<16x128xf32> to vector<16x128xbf16>
    %c0_35 = arith.constant 0 : index
    %c0_36 = arith.constant 0 : index
    %47 = vector.load %arg14[%c0_35, %c0_36] : memref<16x128xbf16, #tpu.memory_space<vmem>>, vector<16x128xbf16>
    tpu.vector_store %arg14[%c0_35, %c0_36], %46 {strides = array<i32>} : memref<16x128xbf16, #tpu.memory_space<vmem>>, vector<16x128xbf16>,
    return
  }
  func.func @transform_0(%arg0: i32) -> (i32, i32) {
    %c0_i32 = arith.constant 0 : i32
    %c0_i32_0 = arith.constant 0 : i32
    return %arg0, %c0_i32 : i32, i32
  }
  func.func @transform_1(%arg0: i32) -> (i32, i32) {
    %c0_i32 = arith.constant 0 : i32
    %c0_i32_0 = arith.constant 0 : i32
    %c0_i32_1 = arith.constant 0 : i32
    return %c0_i32, %c0_i32_0 : i32, i32
  }
  func.func @transform_2(%arg0: i32) -> (i32, i32) {
    %c0_i32 = arith.constant 0 : i32
    %c0_i32_0 = arith.constant 0 : i32
    %c0_i32_1 = arith.constant 0 : i32
    return %c0_i32, %c0_i32_0 : i32, i32
  }
  func.func @transform_3(%arg0: i32) -> (i32, i32) {
    %c0_i32 = arith.constant 0 : i32
    %c0_i32_0 = arith.constant 0 : i32
    %c0_i32_1 = arith.constant 0 : i32
    return %c0_i32, %c0_i32_0 : i32, i32
  }
  func.func @transform_4(%arg0: i32) -> (i32, i32) {
    %c0_i32 = arith.constant 0 : i32
    %c0_i32_0 = arith.constant 0 : i32
    %c0_i32_1 = arith.constant 0 : i32
    return %c0_i32, %c0_i32_0 : i32, i32
  }
  func.func @transform_5(%arg0: i32) -> (i32, i32) {
    %c0_i32 = arith.constant 0 : i32
    %c0_i32_0 = arith.constant 0 : i32
    %c0_i32_1 = arith.constant 0 : i32
    return %c0_i32, %c0_i32_0 : i32, i32
  }
  func.func @transform_6(%arg0: i32) -> (i32, i32) {
    %c0_i32 = arith.constant 0 : i32
    %c0_i32_0 = arith.constant 0 : i32
    %c0_i32_1 = arith.constant 0 : i32
    return %c0_i32, %c0_i32_0 : i32, i32
  }
  func.func @transform_7(%arg0: i32) -> (i32, i32) {
    %c0_i32 = arith.constant 0 : i32
    %c0_i32_0 = arith.constant 0 : i32
    %c0_i32_1 = arith.constant 0 : i32
    return %c0_i32, %c0_i32_0 : i32, i32
  }
  func.func @transform_8(%arg0: i32) -> (i32, i32) {
    %c0_i32 = arith.constant 0 : i32
    %c0_i32_0 = arith.constant 0 : i32
    %c0_i32_1 = arith.constant 0 : i32
    return %c0_i32, %c0_i32_0 : i32, i32
  }
  func.func @transform_9(%arg0: i32) -> (i32, i32) {
    %c0_i32 = arith.constant 0 : i32
    %c0_i32_0 = arith.constant 0 : i32
    %c0_i32_1 = arith.constant 0 : i32
    return %c0_i32, %c0_i32_0 : i32, i32
  }
  func.func @transform_10(%arg0: i32) -> (i32, i32) {
    %c0_i32 = arith.constant 0 : i32
    %c0_i32_0 = arith.constant 0 : i32
    %c0_i32_1 = arith.constant 0 : i32
    return %c0_i32, %c0_i32_0 : i32, i32
  }
  func.func @transform_11(%arg0: i32) -> (i32, i32) {
    %c0_i32 = arith.constant 0 : i32
    %c0_i32_0 = arith.constant 0 : i32
    %c0_i32_1 = arith.constant 0 : i32
    return %c0_i32, %c0_i32_0 : i32, i32
  }
  func.func @transform_12(%arg0: i32) -> (i32, i32) {
    %c0_i32 = arith.constant 0 : i32
    %c0_i32_0 = arith.constant 0 : i32
    %c0_i32_1 = arith.constant 0 : i32
    return %c0_i32, %c0_i32_0 : i32, i32
  }
  func.func @transform_13(%arg0: i32) -> (i32, i32) {
    %c0_i32 = arith.constant 0 : i32
    %c0_i32_0 = arith.constant 0 : i32
    return %arg0, %c0_i32 : i32, i32
  }
}

</mosaic_0001>

<bundles_post_ra>
// kernel: shadow_net_forward.1
= control target key start
LH: loop header
LB: loop body
LE: loop exit
PB: predicated region body
PF: predicated region fallthrough
CT: control target
= control target key end

     0   :  { %18 = vsyncpa [#allocation3], 0  ;;  %s1884_s0 = inlined_call_operand.vmem [shape: bf16[16,784], index: 0, kind: input, shape index: {}]   ;;  %s1885_s1 = inlined_call_operand.hbm [shape: bf16[784,128], index: 1, kind: input, shape index: {}]   ;;  %s1886_s2 = inlined_call_operand.vmem [shape: f32[1,128], index: 2, kind: input, shape index: {}]   ;;  %s1887_s3 = inlined_call_operand.vmem [shape: bf16[128,128], index: 3, kind: input, shape index: {}]   ;;  %s1888_s4 = inlined_call_operand.vmem [shape: f32[1,128], index: 4, kind: input, shape index: {}]   ;;  %s1889_s5 = inlined_call_operand.vmem [shape: bf16[128,128], index: 5, kind: input, shape index: {}]   ;;  %s1890_s6 = inlined_call_operand.vmem [shape: f32[1,128], index: 6, kind: input, shape index: {}]   ;;  %s1891_s7 = inlined_call_operand.hbm [shape: bf16[128,128], index: 7, kind: input, shape index: {}]   ;;  %s1892_s8 = inlined_call_operand.vmem [shape: f32[1,128], index: 8, kind: input, shape index: {}]   ;;  %s1893_s9 = inlined_call_operand.hbm [shape: bf16[128,128], index: 9, kind: input, shape index: {}]   ;;  %s1894_s10 = inlined_call_operand.vmem [shape: f32[1,128], index: 10, kind: input, shape index: {}]   ;;  %s1895_s11 = inlined_call_operand.hbm [shape: bf16[128,128], index: 11, kind: input, shape index: {}]   ;;  %s1896_s12 = inlined_call_operand.vmem [shape: f32[1,128], index: 12, kind: input, shape index: {}]   ;;  %s1897_s13 = inlined_call_operand.vmem [shape: bf16[16,128], index: 13, kind: output, shape index: {}]  }
   0x1   :  { %19 = vsyncpa [#allocation5], 0 }
   0x2   :  { %20 = vsyncpa [#allocation8], 0  ;;  %s50_s27 = sshll.u32 %s1891_s7, 4  ;;  %s1685_s28 = smov [#allocation4]   ;;  %s51_s27 = int_to_ptr.hbm [resolvable:$true] %s50_s27 }
   0x3   :  { %s52_s29 = sshll.u32 %s1685_s28, 4  ;;  %s27_s15 = sshll.u32 %s1885_s1, 4  ;;  %s53_s29 = int_to_ptr.vmem [resolvable:$true] %s52_s29  ;;  %s28_s15 = int_to_ptr.hbm [resolvable:$true] %s27_s15 }
   0x4   :  { %s1686_s16 = smov 64   ;;  %s1687_s17 = smov 4  }
   0x5   :  { %58 = dma.hbm_to_vmem [thread:$0]  %s51_s27, 1024, %s53_s29, [#allocation5], %s1686_s16, %s1686_s16, %s1687_s17  }
   0x6   :  { %s1688_s18 = smov [#allocation2]   ;;  %s65_s22 = sshll.u32 %s1893_s9, 4  ;;  %s66_s22 = int_to_ptr.hbm [resolvable:$true] %s65_s22 }
   0x7   :  { %s29_s19 = sshll.u32 %s1688_s18, 4  ;;  %s80_s24 = sshll.u32 %s1895_s11, 4  ;;  %s30_s19 = int_to_ptr.vmem [resolvable:$true] %s29_s19  ;;  %s81_s24 = int_to_ptr.hbm [resolvable:$true] %s80_s24 }
   0x8   :  { %35 = dma.hbm_to_vmem [thread:$0]  %s28_s15, 6272, %s30_s19, [#allocation3], %s1686_s16, %s1686_s16, %s1687_s17  }
   0x9   :  { %s1689_s25 = smov [#allocation6]   ;;  %s1690_s1 = smov [#allocation7]  }
   0xa   :  { %s67_s26 = sshll.u32 %s1689_s25, 4  ;;  %s82_s27 = sshll.u32 %s1690_s1, 4  ;;  %s68_s26 = int_to_ptr.vmem [resolvable:$true] %s67_s26  ;;  %s83_s27 = int_to_ptr.vmem [resolvable:$true] %s82_s27 }
   0xb   :  { %73 = dma.hbm_to_vmem [thread:$0]  %s66_s22, 1024, %s68_s26, [#allocation5], %s1686_s16, %s1686_s16, %s1687_s17  }
   0xc   :  { %88 = dma.hbm_to_vmem [thread:$0]  %s81_s24, 1024, %s83_s27, [#allocation8], %s1686_s16, %s1686_s16, %s1687_s17  }
   0xd   :  { %1679 = dma.done.wait [#allocation3], 6272  }
   0xe   :  { %1680 = vsyncadd [#allocation3], 4294961024 }
   0xf   :  { %1681 = dma.done.wait [#allocation5], 2048  }
  0x10   :  { %1682 = vsyncadd [#allocation5], 4294965248 }
  0x11   :  { %1683 = dma.done.wait [#allocation8], 1024  }
  0x12   :  { %1684 = vsyncadd [#allocation8], 4294966272  ;;  %v1484_v0 = vld [vmem:[#allocation2 + $0x38] sm:$0xff]  ;;  %v1483_v4 = vld [vmem:[#allocation2 + $0x30] sm:$0xff]  ;;  %vm547_vm0 = vcmask 130048  }
  0x13   :  { %v1492_v1 = vld [vmem:[#allocation2 + $0x78] sm:$0xff]  ;;  %551 = vmatpush.bf16.msra.mxu0 %v1484_v0  ;;  %v1491_v5 = vld [vmem:[#allocation2 + $0x70] sm:$0xff]  ;;  %v1482_v8 = vld [vmem:[#allocation2 + $0x28] sm:$0xff] }
  0x14   :  { %v1500_v2 = vld [vmem:[#allocation2 + $0xb8] sm:$0xff]  ;;  %565 = vmatpush.bf16.msra.mxu1 %v1492_v1  ;;  %v1499_v6 = vld [vmem:[#allocation2 + $0xb0] sm:$0xff]  ;;  %v1490_v9 = vld [vmem:[#allocation2 + $0x68] sm:$0xff] }
  0x15   :  { %v1508_v3 = vld [vmem:[#allocation2 + $0xf8] sm:$0xff]  ;;  %579 = vmatpush.bf16.msra.mxu2 %v1500_v2  ;;  %v1507_v7 = vld [vmem:[#allocation2 + $0xf0] sm:$0xff]  ;;  %v1498_v10 = vld [vmem:[#allocation2 + $0xa8] sm:$0xff] }
  0x16   :  { %593 = vmatpush.bf16.msra.mxu3 %v1508_v3  ;;  %v1506_v11 = vld [vmem:[#allocation2 + $0xe8] sm:$0xff]  ;;  %v1481_v12 = vld [vmem:[#allocation2 + $0x20] sm:$0xff]  ;;  %v1480_v16 = vld [vmem:[#allocation2 + $0x18] sm:$0xff] }
  0x17   :  { %552 = vmatpush.bf16.msra.mxu0 %v1483_v4  ;;  %v1489_v13 = vld [vmem:[#allocation2 + $0x60] sm:$0xff]  ;;  %v1488_v17 = vld [vmem:[#allocation2 + $0x58] sm:$0xff]  ;;  %v1479_v20 = vld [vmem:[#allocation2 + $0x10] sm:$0xff] }
  0x18   :  { %566 = vmatpush.bf16.msra.mxu1 %v1491_v5  ;;  %v1497_v14 = vld [vmem:[#allocation2 + $0xa0] sm:$0xff]  ;;  %v1496_v18 = vld [vmem:[#allocation2 + $0x98] sm:$0xff]  ;;  %v1487_v21 = vld [vmem:[#allocation2 + $0x50] sm:$0xff] }
  0x19   :  { %580 = vmatpush.bf16.msra.mxu2 %v1499_v6  ;;  %v1505_v15 = vld [vmem:[#allocation2 + $0xe0] sm:$0xff]  ;;  %v1504_v19 = vld [vmem:[#allocation2 + $0xd8] sm:$0xff]  ;;  %v1495_v22 = vld [vmem:[#allocation2 + $0x90] sm:$0xff] }
  0x1a   :  { %594 = vmatpush.bf16.msra.mxu3 %v1507_v7  ;;  %v1503_v23 = vld [vmem:[#allocation2 + $0xd0] sm:$0xff]  ;;  %v1478_v24 = vld [vmem:[#allocation2 + $0x8] sm:$0xff]  ;;  %v1477_v28 = vld [vmem:[#allocation2] sm:$0xff] }
  0x1b   :  { %553 = vmatpush.bf16.msra.mxu0 %v1482_v8  ;;  %v1486_v25 = vld [vmem:[#allocation2 + $0x48] sm:$0xff]  ;;  %v1485_v29 = vld [vmem:[#allocation2 + $0x40] sm:$0xff]  ;;  %v1473_v31 = vld [vmem:[%s1884_s0 + $0x18] sm:$0xf0] }
  0x1c   :  { %567 = vmatpush.bf16.msra.mxu1 %v1490_v9  ;;  %v1494_v26 = vld [vmem:[#allocation2 + $0x88] sm:$0xff]  ;;  %v1087_v30 = vld [vmem:[%s1884_s0] sm:$0xf]  ;;  %v1470_v32 = vld [vmem:[%s1884_s0 + $0x4] sm:$0xf] }
  0x1d   :  { %581 = vmatpush.bf16.msra.mxu2 %v1498_v10  ;;  %v1502_v27 = vld [vmem:[#allocation2 + $0xc8] sm:$0xff]  ;;  %v1089_v33 = vld [vmem:[%s1884_s0 + $0x1c] sm:$0xf0]  ;;  %v1516_v34 = vld [vmem:[#allocation2 + $0x138] sm:$0xff]  ;;  %v1088_v40 = vor.u32 %v1473_v31, %v1087_v30 }
  0x1e   :  { %595 = vmatpush.bf16.msra.mxu3 %v1506_v11  ;;  %v1524_v35 = vld [vmem:[#allocation2 + $0x178] sm:$0xff]  ;;  %v1493_v36 = vld [vmem:[#allocation2 + $0x80] sm:$0xff]  ;;  %v1095_v38 = vld [vmem:[%s1884_s0 + $0x8] sm:$0xf]  ;;  %v1092_v43 = vor.u32 %v1470_v32, %v1089_v33 }
  0x1f   :  { %554 = vmatpush.bf16.msra.mxu0 %v1481_v12  ;;  %v1501_v37 = vld [vmem:[#allocation2 + $0xc0] sm:$0xff]  ;;  %v1471_v41 = vld [vmem:[%s1884_s0 + $0xc] sm:$0xf]  ;;  %v1097_v42 = vld [vmem:[%s1884_s0 + $0x24] sm:$0xf0] }
  0x20   :  { %568 = vmatpush.bf16.msra.mxu1 %v1489_v13  ;;  %v1474_v39 = vld [vmem:[%s1884_s0 + $0x20] sm:$0xf0]  ;;  %v1515_v45 = vld [vmem:[#allocation2 + $0x130] sm:$0xff]  ;;  %v1100_v48 = vor.u32 %v1471_v41, %v1097_v42  ;;  %v1514_v49 = vld [vmem:[#allocation2 + $0x128] sm:$0xff] }
  0x21   :  { %582 = vmatpush.bf16.msra.mxu2 %v1497_v14  ;;  %v1525_v44 = vld [vmem:[#allocation2 + $0x180] sm:$0xff]  ;;  %v1523_v46 = vld [vmem:[#allocation2 + $0x170] sm:$0xff]  ;;  %v1096_v47 = vor.u32 %v1474_v39, %v1095_v38  ;;  %v1522_v50 = vld [vmem:[#allocation2 + $0x168] sm:$0xff] }
  0x22   :  { %596 = vmatpush.bf16.msra.mxu3 %v1505_v15  ;;  %v1513_v51 = vld [vmem:[#allocation2 + $0x120] sm:$0xff]  ;;  %v1512_v53 = vld [vmem:[#allocation2 + $0x118] sm:$0xff]  ;;  %v1476_v56 = vld [vmem:[%s1884_s0 + $0x30] sm:$0xf0] }
  0x23   :  { %555 = vmatpush.bf16.msra.mxu0 %v1480_v16  ;;  %v1521_v52 = vld [vmem:[#allocation2 + $0x160] sm:$0xff]  ;;  %v1520_v54 = vld [vmem:[#allocation2 + $0x158] sm:$0xff]  ;;  %v1511_v57 = vld [vmem:[#allocation2 + $0x110] sm:$0xff] }
  0x24   :  { %569 = vmatpush.bf16.msra.mxu1 %v1488_v17  ;;  %v1111_v55 = vld [vmem:[%s1884_s0 + $0x18] sm:$0xf]  ;;  %v1519_v58 = vld [vmem:[#allocation2 + $0x150] sm:$0xff]  ;;  %v1510_v60 = vld [vmem:[#allocation2 + $0x108] sm:$0xff] }
  0x25   :  { %583 = vmatpush.bf16.msra.mxu2 %v1496_v18  ;;  %v1112_v59 = vor.u32 %v1476_v56, %v1111_v55  ;;  %v1518_v61 = vld [vmem:[#allocation2 + $0x148] sm:$0xff]  ;;  %v1509_v62 = vld [vmem:[#allocation2 + $0x100] sm:$0xff]  ;;  %v1103_v0 = vld [vmem:[%s1884_s0 + $0x10] sm:$0xf] }
  0x26   :  { %597 = vmatpush.bf16.msra.mxu3 %v1504_v19  ;;  %v1517_v63 = vld [vmem:[#allocation2 + $0x140] sm:$0xff]  ;;  %v1475_v1 = vld [vmem:[%s1884_s0 + $0x28] sm:$0xf0]  ;;  %v1472_v2 = vld [vmem:[%s1884_s0 + $0x14] sm:$0xf] }
  0x27   :  { %556 = vmatpush.bf16.msra.mxu0 %v1479_v20  ;;  %v1105_v3 = vld [vmem:[%s1884_s0 + $0x2c] sm:$0xf0]  ;;  %v1104_v4 = vor.u32 %v1475_v1, %v1103_v0  ;;  %v1533_v6 = vld [vmem:[%s1887_s3 + $0x38] sm:$0xff]  ;;  %v1531_v8 = vld [vmem:[%s1887_s3 + $0x28] sm:$0xff] }
  0x28   :  { %570 = vmatpush.bf16.msra.mxu1 %v1487_v21  ;;  %v1108_v5 = vor.u32 %v1472_v2, %v1105_v3  ;;  %v1532_v7 = vld [vmem:[%s1887_s3 + $0x30] sm:$0xff]  ;;  %v1530_v9 = vld [vmem:[%s1887_s3 + $0x20] sm:$0xff]  ;;  %v1529_v10 = vld [vmem:[%s1887_s3 + $0x18] sm:$0xff] }
  0x29   :  { %584 = vmatpush.bf16.msra.mxu2 %v1495_v22  ;;  %v1528_v11 = vld [vmem:[%s1887_s3 + $0x10] sm:$0xff]  ;;  %v1527_v12 = vld [vmem:[%s1887_s3 + $0x8] sm:$0xff]  ;;  %v1526_v16 = vld [vmem:[%s1887_s3] sm:$0xff] }
  0x2a   :  { %598 = vmatpush.bf16.msra.mxu3 %v1503_v23  ;;  %v1577_v17 = vld [vmem:[%s1886_s2] ss:$0 sm:$0xff]  ;;  %v1541_v18 = vld [vmem:[%s1889_s5 + $0x38] sm:$0xff]  ;;  %v1540_v20 = vld [vmem:[%s1889_s5 + $0x30] sm:$0xff] }
  0x2b   :  { %557 = vmatpush.bf16.msra.mxu0 %v1478_v24  ;;  %v1548_v55 = vld [vmem:[#allocation4 + $0x30] sm:$0xff]  ;;  %v1547_v56 = vld [vmem:[#allocation4 + $0x28] sm:$0xff]  ;;  %v1545_v2 = vld [vmem:[#allocation4 + $0x18] sm:$0xff] }
  0x2c   :  { %571 = vmatpush.bf16.msra.mxu1 %v1486_v25  ;;  %v1539_v25 = vld [vmem:[%s1889_s5 + $0x28] sm:$0xff]  ;;  %v1544_v3 = vld [vmem:[#allocation4 + $0x10] sm:$0xff] }
  0x2d   :  { %585 = vmatpush.bf16.msra.mxu2 %v1494_v26 }
  0x2e   :  { %599 = vmatpush.bf16.msra.mxu3 %v1502_v27 }
  0x2f   :  { %558 = vmatpush.bf16.msra.mxu0 %v1477_v28 }
  0x30   :  { %572 = vmatpush.bf16.msra.mxu1 %v1485_v29  ;;  %v1538_v29 = vld [vmem:[%s1889_s5 + $0x20] sm:$0xff] }
  0x31   :  { %586 = vmatpush.bf16.msra.mxu2 %v1493_v36 }
  0x32   :  { %600 = vmatpush.bf16.msra.mxu3 %v1501_v37  ;;  %559 = vmatmul.bf16.vlgmr.msra.gmra.mxu0 %v1088_v40 }
  0x33   :  { %607 = vmatpush.bf16.msrb.mxu0 %v1516_v34  ;;  %573 = vmatmul.bf16.vlgmr.msra.gmra.mxu1 %v1092_v43 }
  0x34   :  { %621 = vmatpush.bf16.msrb.mxu1 %v1524_v35  ;;  %587 = vmatmul.bf16.vlgmr.msra.gmra.mxu2 %v1096_v47 }
  0x35   :  { %642 = vmatpush.bf16.msrb.mxu2 %v1525_v44  ;;  %601 = vmatmul.bf16.vlgmr.msra.gmra.mxu3 %v1100_v48 }
  0x36   :  { %720 = vmatpush.bf16.msrb.mxu3 %v1533_v6  ;;  %v1557_v6 = vld [vmem:[#allocation6 + $0x38] sm:$0xff] }
  0x37   :  { %608 = vmatpush.bf16.msrb.mxu0 %v1515_v45 }
  0x38   :  { %622 = vmatpush.bf16.msrb.mxu1 %v1523_v46 }
  0x39   :  { %805 = vmatpush.bf16.msra.mxu2 %v1541_v18  ;;  %v1553_v18 = vld [vmem:[#allocation6 + $0x18] sm:$0xff] }
  0x3a   :  { %721 = vmatpush.bf16.msrb.mxu3 %v1532_v7  ;;  %v1556_v7 = vld [vmem:[#allocation6 + $0x30] sm:$0xff] }
  0x3b   :  { %609 = vmatpush.bf16.msrb.mxu0 %v1514_v49 }
  0x3c   :  { %623 = vmatpush.bf16.msrb.mxu1 %v1522_v50  ;;  %v1537_v50 = vld [vmem:[%s1889_s5 + $0x18] sm:$0xff] }
  0x3d   :  { %806 = vmatpush.bf16.msra.mxu2 %v1540_v20  ;;  %v1551_v20 = vld [vmem:[#allocation6 + $0x8] sm:$0xff] }
  0x3e   :  { %722 = vmatpush.bf16.msrb.mxu3 %v1531_v8  ;;  %v1555_v8 = vld [vmem:[#allocation6 + $0x28] sm:$0xff] }
  0x3f   :  { %610 = vmatpush.bf16.msrb.mxu0 %v1513_v51  ;;  %v1536_v51 = vld [vmem:[%s1889_s5 + $0x10] sm:$0xff] }
  0x40   :  { %624 = vmatpush.bf16.msrb.mxu1 %v1521_v52  ;;  %v1535_v52 = vld [vmem:[%s1889_s5 + $0x8] sm:$0xff] }
  0x41   :  { %807 = vmatpush.bf16.msra.mxu2 %v1539_v25  ;;  %v1562_v25 = vld [vmem:[#allocation7 + $0x20] sm:$0xff] }
  0x42   :  { %723 = vmatpush.bf16.msrb.mxu3 %v1530_v9  ;;  %v1554_v9 = vld [vmem:[#allocation6 + $0x20] sm:$0xff] }
  0x43   :  { %611 = vmatpush.bf16.msrb.mxu0 %v1512_v53  ;;  %v1534_v53 = vld [vmem:[%s1889_s5] sm:$0xff] }
  0x44   :  { %625 = vmatpush.bf16.msrb.mxu1 %v1520_v54  ;;  %1309 = vmatmul.msk.bf16.vlgmr.msrb.gmra.mxu2 %vm547_vm0, %v1112_v59  ;;  %v1549_v54 = vld [vmem:[#allocation4 + $0x38] sm:$0xff] }
  0x45   :  { %808 = vmatpush.bf16.msra.mxu2 %v1538_v29  ;;  %v1578_v59 = vld [vmem:[%s1888_s4] ss:$0 sm:$0xff] }
  0x46   :  { %724 = vmatpush.bf16.msrb.mxu3 %v1529_v10 }
  0x47   :  { %612 = vmatpush.bf16.msrb.mxu0 %v1511_v57  ;;  %v1546_v57 = vld [vmem:[#allocation4 + $0x20] sm:$0xff] }
  0x48   :  { %626 = vmatpush.bf16.msrb.mxu1 %v1519_v58 }
  0x49   :  { %809 = vmatpush.bf16.msra.mxu2 %v1537_v50 }
  0x4a   :  { %725 = vmatpush.bf16.msrb.mxu3 %v1528_v11  ;;  %v1579_v11 = vld [vmem:[%s1890_s6] ss:$0 sm:$0xff] }
  0x4b   :  { %613 = vmatpush.bf16.msrb.mxu0 %v1510_v60 }
  0x4c   :  { %627 = vmatpush.bf16.msrb.mxu1 %v1518_v61 }
  0x4d   :  { %810 = vmatpush.bf16.msra.mxu2 %v1536_v51 }
  0x4e   :  { %726 = vmatpush.bf16.msrb.mxu3 %v1527_v12 }
  0x4f   :  { %614 = vmatpush.bf16.msrb.mxu0 %v1509_v62 }
  0x50   :  { %628 = vmatpush.bf16.msrb.mxu1 %v1517_v63 }
  0x51   :  { %811 = vmatpush.bf16.msra.mxu2 %v1535_v52 }
  0x52   :  { %615 = vmatmul.bf16.vlgmr.msrb.gmra.mxu0 %v1104_v4  ;;  %727 = vmatpush.bf16.msrb.mxu3 %v1526_v16  ;;  %v1543_v4 = vld [vmem:[#allocation4 + $0x8] sm:$0xff] }
  0x53   :  { %629 = vmatmul.bf16.vlgmr.msrb.gmra.mxu1 %v1108_v5  ;;  %890 = vmatpush.bf16.msra.mxu0 %v1549_v54  ;;  %v1542_v5 = vld [vmem:[#allocation4] sm:$0xff] }
  0x54   :  { %975 = vmatpush.bf16.msra.mxu1 %v1557_v6 }
  0x55   :  { %812 = vmatpush.bf16.msra.mxu2 %v1534_v53 }
  0x57   :  { %891 = vmatpush.bf16.msra.mxu0 %v1548_v55 }
  0x58   :  { %976 = vmatpush.bf16.msra.mxu1 %v1556_v7 }
  0x5b   :  { %892 = vmatpush.bf16.msra.mxu0 %v1547_v56 }
  0x5c   :  { %977 = vmatpush.bf16.msra.mxu1 %v1555_v8 }
  0x5f   :  { %893 = vmatpush.bf16.msra.mxu0 %v1546_v57 }
  0x60   :  { %978 = vmatpush.bf16.msra.mxu1 %v1554_v9 }
  0x63   :  { %894 = vmatpush.bf16.msra.mxu0 %v1545_v2 }
  0x64   :  { %979 = vmatpush.bf16.msra.mxu1 %v1553_v18 }
  0x67   :  { %895 = vmatpush.bf16.msra.mxu0 %v1544_v3 }
  0x6b   :  { %896 = vmatpush.bf16.msra.mxu0 %v1543_v4 }
  0x6f   :  { %897 = vmatpush.bf16.msra.mxu0 %v1542_v5 }
  0xaf   :  { %v560_v13 = vpop.f32.mrf.mxu0 }
  0xb0   :  { %v574_v14 = vpop.f32.mrf.mxu1  ;;  %v561_v19 = vadd.f32 %v1577_v17, %v560_v13 }
  0xb2   :  { %v575_v24 = vadd.f32 %v574_v14, %v561_v19  ;;  %v1552_v19 = vld [vmem:[#allocation6 + $0x10] sm:$0xff] }
  0xb3   :  { %980 = vmatpush.bf16.msra.mxu1 %v1552_v19 }
  0xb7   :  { %v588_v15 = vpop.f32.mrf.mxu2  ;;  %v562_v21 = vpop.f32.mrf.mxu0  ;;  %981 = vmatpush.bf16.msra.mxu1 %v1551_v20 }
  0xb8   :  { %v576_v22 = vpop.f32.mrf.mxu1  ;;  %v602_v26 = vpop.f32.mrf.mxu3  ;;  %v563_v27 = vadd.f32 %v1577_v17, %v562_v21  ;;  %v589_v28 = vadd.f32 %v588_v15, %v575_v24  ;;  %v1550_v21 = vld [vmem:[#allocation6] sm:$0xff]  ;;  %v1563_v24 = vld [vmem:[#allocation7 + $0x28] sm:$0xff] }
  0xba   :  { %v577_v30 = vadd.f32 %v576_v22, %v563_v27  ;;  %v603_v33 = vadd.f32 %v602_v26, %v589_v28  ;;  %v1565_v22 = vld [vmem:[#allocation7 + $0x38] sm:$0xff] }
  0xbb   :  { %982 = vmatpush.bf16.msra.mxu1 %v1550_v21  ;;  %1060 = vmatpush.bf16.msra.mxu3 %v1565_v22  ;;  %v1580_v27 = vld [vmem:[%s1892_s8] ss:$0 sm:$0xff] }
  0xbf   :  { %v590_v23 = vpop.f32.mrf.mxu2 }
  0xc0   :  { %v591_v35 = vadd.f32 %v590_v23, %v577_v30  ;;  %v604_v37 = vpop.f32.mrf.mxu3  ;;  %v1564_v23 = vld [vmem:[#allocation7 + $0x30] sm:$0xff] }
  0xc1   :  { %1061 = vmatpush.bf16.msra.mxu3 %v1564_v23 }
  0xc2   :  { %v605_v38 = vadd.f32 %v604_v37, %v591_v35  ;;  %v1560_v35 = vld [vmem:[#allocation7 + $0x10] sm:$0xff]  ;;  %v1558_v37 = vld [vmem:[#allocation7] sm:$0xff] }
  0xc5   :  { %1062 = vmatpush.bf16.msra.mxu3 %v1563_v24 }
  0xc7   :  { %v644_v34 = vpop.f32.mrf.mxu2 }
  0xc9   :  { %1063 = vmatpush.bf16.msra.mxu3 %v1562_v25 }
  0xcf   :  { %v616_v31 = vpop.f32.mrf.mxu0  ;;  %v646_v45 = vpop.f32.mrf.mxu2 }
  0xd0   :  { %v630_v32 = vpop.f32.mrf.mxu1  ;;  %v617_v36 = vadd.f32 %v616_v31, %v603_v33 }
  0xd2   :  { %v631_v39 = vadd.f32 %v630_v32, %v617_v36  ;;  %v1559_v36 = vld [vmem:[#allocation7 + $0x8] sm:$0xff] }
  0xd4   :  { %v645_v43 = vadd.f32 %v644_v34, %v631_v39  ;;  %v1561_v34 = vld [vmem:[#allocation7 + $0x18] sm:$0xff] }
  0xd5   :  { %1064 = vmatpush.bf16.msra.mxu3 %v1561_v34  ;;  %v1581_v39 = vld [vmem:[%s1894_s10] ss:$0 sm:$0xff] }
  0xd6   :  { %v649_v47 = vmax.f32 %v645_v43, 0.0 }
  0xd7   :  { %v618_v40 = vpop.f32.mrf.mxu0 }
  0xd8   :  { %v619_v41 = vadd.f32 %v618_v40, %v605_v38  ;;  %v632_v42 = vpop.f32.mrf.mxu1 }
  0xd9   :  { %1065 = vmatpush.bf16.msra.mxu3 %v1560_v35 }
  0xda   :  { %v633_v44 = vadd.f32 %v632_v42, %v619_v41 }
  0xdc   :  { %v647_v46 = vadd.f32 %v646_v45, %v633_v44 }
  0xdd   :  { %1066 = vmatpush.bf16.msra.mxu3 %v1559_v36 }
  0xde   :  { %v650_v48 = vmax.f32 %v647_v46, 0.0 }
  0xe0   :  { %v651_v49 = vpack.c.bf16 %v650_v48, %v649_v47  ;;  %v1582_v47 = vld [vmem:[%s1896_s12] ss:$0 sm:$0xff] }
  0xe1   :  { %1067 = vmatpush.bf16.msra.mxu3 %v1558_v37 }
  0xe2   :  { %728 = vmatmul.bf16.vlgmr.msrb.gmra.mxu3 %v651_v49 }
 0x165   :  { %v729_v58 = vpop.f32.mrf.mxu3 }
 0x166   :  { %v730_v60 = vadd.f32 %v1578_v59, %v729_v58 }
 0x168   :  { %v734_v63 = vmax.f32 %v730_v60, 0.0 }
 0x16d   :  { %v731_v61 = vpop.f32.mrf.mxu3 }
 0x16e   :  { %v732_v62 = vadd.f32 %v1578_v59, %v731_v61 }
 0x170   :  { %v735_v0 = vmax.f32 %v732_v62, 0.0 }
 0x172   :  { %v736_v1 = vpack.c.bf16 %v735_v0, %v734_v63 }
 0x174   :  { %813 = vmatmul.bf16.vlgmr.msra.gmra.mxu2 %v736_v1 }
 0x1f7   :  { %v814_v10 = vpop.f32.mrf.mxu2 }
 0x1f8   :  { %v815_v12 = vadd.f32 %v1579_v11, %v814_v10 }
 0x1fa   :  { %v819_v15 = vmax.f32 %v815_v12, 0.0 }
 0x1ff   :  { %v816_v13 = vpop.f32.mrf.mxu2 }
 0x200   :  { %v817_v14 = vadd.f32 %v1579_v11, %v816_v13 }
 0x202   :  { %v820_v16 = vmax.f32 %v817_v14, 0.0 }
 0x204   :  { %v821_v17 = vpack.c.bf16 %v820_v16, %v819_v15 }
 0x206   :  { %898 = vmatmul.bf16.vlgmr.msra.gmra.mxu0 %v821_v17 }
 0x283   :  { %v899_v26 = vpop.f32.mrf.mxu0 }
 0x284   :  { %v900_v28 = vadd.f32 %v1580_v27, %v899_v26 }
 0x286   :  { %v904_v31 = vmax.f32 %v900_v28, 0.0 }
 0x28b   :  { %v901_v29 = vpop.f32.mrf.mxu0 }
 0x28c   :  { %v902_v30 = vadd.f32 %v1580_v27, %v901_v29 }
 0x28e   :  { %v905_v32 = vmax.f32 %v902_v30, 0.0 }
 0x290   :  { %v906_v33 = vpack.c.bf16 %v905_v32, %v904_v31 }
 0x292   :  { %983 = vmatmul.bf16.vlgmr.msra.gmra.mxu1 %v906_v33 }
 0x30f   :  { %v984_v38 = vpop.f32.mrf.mxu1 }
 0x310   :  { %v985_v40 = vadd.f32 %v1581_v39, %v984_v38 }
 0x312   :  { %v989_v43 = vmax.f32 %v985_v40, 0.0 }
 0x317   :  { %v986_v41 = vpop.f32.mrf.mxu1 }
 0x318   :  { %v987_v42 = vadd.f32 %v1581_v39, %v986_v41 }
 0x31a   :  { %v990_v44 = vmax.f32 %v987_v42, 0.0 }
 0x31c   :  { %v991_v45 = vpack.c.bf16 %v990_v44, %v989_v43 }
 0x31e   :  { %1068 = vmatmul.bf16.vlgmr.msra.gmra.mxu3 %v991_v45 }
 0x3a1   :  { %v1069_v46 = vpop.f32.mrf.mxu3 }
 0x3a2   :  { %v1070_v49 = vadd.f32 %v1582_v47, %v1069_v46 }
 0x3a9   :  { %v1071_v48 = vpop.f32.mrf.mxu3 }
 0x3aa   :  { %v1072_v50 = vadd.f32 %v1582_v47, %v1071_v48 }
 0x3ac   :  { %v1569_v51 = vpack.c.bf16 %v1072_v50, %v1070_v49 }
 0x3ae   :  { %1570 = vst [vmem:[%s1897_s13] sm:$0xff] %v1569_v51  }
 0x3af   :  { %1082 = vsyncpa [#allocation3], 1 }
 0x3b0   :  { %1083 = vsyncpa [#allocation5], 1 }
 0x3b1   :  { %1084 = vsyncpa [#allocation8], 1 }

</bundles_post_ra>
